<compile_context>
chip_gen: v7x
topology: tpu7x:2x2x1
jax: 0.10.0
libtpu: 0.0.40
codegen_flags: <defaults>
</compile_context>

<pallas_src>
import functools

import numpy as np

import jax
import jax.numpy as jnp
from jax.experimental import pallas as pl
from jax.experimental.pallas import tpu as pltpu


_K_PACKED = 64  # 4 row-taps x 4 col-taps x 4 space-to-depth phases (>= 49 real taps)
_VMEM_LIMIT = 32 * 1024 * 1024


def _round_up(x, m):
    return ((x + m - 1) // m) * m


def _build_s2d_perm():
    """(64, 49) 0/1 matrix mapping packed-K index -> PyTorch (dh*7+dw) tap."""
    perm = np.zeros((_K_PACKED, 49), dtype=np.float32)
    for i in range(4):
        for j in range(4):
            for a in range(2):
                for b in range(2):
                    dh, dw = 2 * i + a, 2 * j + b
                    if dh < 7 and dw < 7:
                        perm[16 * i + 4 * j + 2 * a + b, dh * 7 + dw] = 1.0
    return perm


_S2D_PERM = _build_s2d_perm()


# ----------------------------------------------------------------------------
# Glue (plain JAX, ~3.3x input bytes): pad + space-to-depth + width-tap pack.
#   x16[n, h2, wo, 4*j + 2*a + b] = x_pad[n, 2*h2 + a, 2*(wo + j) + b]
# so that the K=64 patch row for output pixel (ho, wo) is the lane-concat of
# x16[n, ho + i, wo, :] for i = 0..3 (row-tap expansion done inside the kernel).
# ----------------------------------------------------------------------------
def space_to_depth_taps(x2d, p=3):
    N, H, W = x2d.shape
    Ho = (H + 2 * p - 7) // 2 + 1
    Wo = (W + 2 * p - 7) // 2 + 1
    He = Ho + 3
    hp_need = 2 * Ho + 6
    wp_need = 2 * Wo + 6
    xp = jnp.pad(x2d, ((0, 0), (p, hp_need - H - p), (p, wp_need - W - p)))
    planes = []
    for j in range(4):
        for a in range(2):
            for b in range(2):
                planes.append(
                    xp[:, a:a + 2 * He:2, 2 * j + b:2 * j + b + 2 * Wo:2])
    x16 = jnp.stack(planes, axis=-1)  # (N, He, Wo, 16) bf16
    return x16, Ho, Wo


# ----------------------------------------------------------------------------
# Kernel 1: conv1 as a fused (in-VMEM) im2col + single K=64 MXU matmul.
#   grid = (N, Ho // tr); one image's x16 stays resident across its row tiles.
# ----------------------------------------------------------------------------
def conv1_kernel(x16_ref, w_ref, o_ref, *, tr):
    # x16_ref: (He, Wo, 16) bf16 (batch dim squeezed), w_ref: (64, Cout) bf16
    row0 = pl.program_id(1) * tr
    # Row-tap expansion: 4 slices along the (cheap, outer) He axis, packed
    # along lanes to form the (tr, Wo, 64) patch tile entirely in VMEM.
    pieces = [x16_ref[pl.ds(row0 + i, tr), :, :] for i in range(4)]
    patches = jnp.concatenate(pieces, axis=-1)               # (tr, Wo, 64)
    t, wo, k = patches.shape
    patches = patches.reshape(t * wo, k)                     # (tr*Wo, 64)
    acc = jnp.dot(patches, w_ref[...], preferred_element_type=jnp.float32)
    o_ref[...] = acc.astype(o_ref.dtype)                     # (tr*Wo, Cout)


def _pick_row_tile(ho, wo, c_out, budget_bytes=10 * 1024 * 1024):
    # ~ bf16 out (double buffered) + bf16 patches + f32 accumulator, per row.
    per_row = wo * c_out * 10
    if ho * per_row <= budget_bytes:
        return ho
    for cand in range(ho - 1, 0, -1):
        if ho % cand != 0:
            continue
        if (cand * wo) % 8 != 0:          # keep the output block 8-aligned
            continue
        if cand * per_row <= budget_bytes:
            return cand
    return ho  # fallback: whole image per step (may need a larger vmem limit)


def conv1_pallas(x16, w64, ho, wo):
    N, He, _, _ = x16.shape
    c_out = w64.shape[1]
    S = ho * wo
    tr = _pick_row_tile(ho, wo, c_out)

    return pl.pallas_call(
        functools.partial(conv1_kernel, tr=tr),
        out_shape=jax.ShapeDtypeStruct((N, S, c_out), jnp.bfloat16),
        grid=(N, ho // tr),
        in_specs=[
            # whole-image x16 block; re-DMAed only when the image index changes
            pl.BlockSpec((None, He, wo, 16), lambda n, r: (n, 0, 0, 0)),
            pl.BlockSpec((_K_PACKED, c_out), lambda n, r: (0, 0)),
        ],
        out_specs=pl.BlockSpec((None, tr * wo, c_out), lambda n, r: (n, r, 0)),
        compiler_params=pltpu.CompilerParams(
            dimension_semantics=("parallel", "parallel"),
            vmem_limit_bytes=_VMEM_LIMIT,
        ),
    )(x16, w64)


# ----------------------------------------------------------------------------
# Kernel 2: global-average-pool + fc + activation.
#   grid = (N [parallel], S/ts [arbitrary]); channel sums accumulate in a
#   per-image (1, C) f32 VMEM scratch; the last spatial step does
#   mean -> Linear -> sigmoid (NC==1) / softmax (NC>1), matching the module.
# ----------------------------------------------------------------------------
def head_kernel(feat_ref, fcw_ref, fcb_ref, o_ref, sum_ref, *, inv_s,
                use_softmax):
    s = pl.program_id(1)

    @pl.when(s == 0)
    def _():
        sum_ref[...] = jnp.zeros_like(sum_ref)

    # f32 cast folded into the reduction (no full-tile f32 materialization).
    sum_ref[...] += jnp.sum(feat_ref[...], axis=0, dtype=jnp.float32,
                            keepdims=True)                    # (1, C)

    @pl.when(s == pl.num_programs(1) - 1)
    def _():
        pooled = sum_ref[...] * inv_s                         # (1, C)
        w = fcw_ref[...]                                      # (NC, C) f32
        if w.shape[0] == 1:
            # Tiny FC (num_classes == 1): VPU multiply + lane reduce.
            logits = jnp.sum(pooled * w, axis=-1, keepdims=True)        # (1, 1)
        else:
            logits = jax.lax.dot_general(
                pooled, w, (((1,), (1,)), ((), ())),
                preferred_element_type=jnp.float32)                     # (1, NC)
        logits = logits + fcb_ref[...]
        if use_softmax:
            o_ref[...] = jax.nn.softmax(logits, axis=-1)
        else:
            o_ref[...] = jax.nn.sigmoid(logits)


def _pick_spatial_tile(S, target=2048):
    if S <= target:
        return S, S                               # single full block
    for cand in range((target // 8) * 8, 7, -8):  # largest 8-aligned divisor
        if S % cand == 0:
            return cand, S
    ts = _round_up(min(target, S), 8)             # fallback: zero padding
    return ts, _round_up(S, ts)


def head_pallas(feat, fc_w, fc_b, *, ts_target=2048):
    N, S, C = feat.shape
    NC = fc_w.shape[0]
    ts, S_pad = _pick_spatial_tile(S, ts_target)
    if S_pad != S:
        # Zero rows add nothing to the sum; we divide by the true S below.
        feat = jnp.pad(feat, ((0, 0), (0, S_pad - S), (0, 0)))

    fc_wt = jnp.asarray(fc_w, jnp.float32)            # (NC, C)
    fc_b2 = jnp.asarray(fc_b, jnp.float32).reshape(1, NC)

    kernel = functools.partial(
        head_kernel, inv_s=1.0 / float(S), use_softmax=(NC > 1))

    out = pl.pallas_call(
        kernel,
        out_shape=jax.ShapeDtypeStruct((N, 1, NC), jnp.float32),
        grid=(N, S_pad // ts),
        in_specs=[
            pl.BlockSpec((None, ts, C), lambda n, s: (n, s, 0)),   # stream S
            pl.BlockSpec((NC, C), lambda n, s: (0, 0)),            # fc weight
            pl.BlockSpec((1, NC), lambda n, s: (0, 0)),            # fc bias
        ],
        out_specs=pl.BlockSpec((None, 1, NC), lambda n, s: (n, 0, 0)),
        scratch_shapes=[pltpu.VMEM((1, C), jnp.float32)],
        compiler_params=pltpu.CompilerParams(
            dimension_semantics=("parallel", "arbitrary"),
            vmem_limit_bytes=_VMEM_LIMIT,
        ),
    )(feat, fc_wt, fc_b2)
    return out.reshape(N, NC)


# ----------------------------------------------------------------------------
# Full forward: conv1 -> (backbone omitted) -> GAP -> fc -> sigmoid/softmax.
#   x_nchw: [N, 1, H, W] f32 ; conv1_w: [64, 1, 7, 7] ; fc_w: [NC, C] ; fc_b: [NC]
# ----------------------------------------------------------------------------
def classifier_forward(x_nchw, conv1_w, fc_w, fc_b):
    N, Cin, H, W = x_nchw.shape
    assert Cin == 1, "Classifier replaces conv1 with a 1-channel conv"
    # bf16 activations / weights with f32 MXU accumulation (~1e-2 rel. error
    # vs PyTorch's f32 conv); halves the moved bytes everywhere.
    x2d = x_nchw[:, 0, :, :].astype(jnp.bfloat16)          # (N, H, W)
    x16, ho, wo = space_to_depth_taps(x2d, p=3)            # (N, Ho+3, Wo, 16)

    c_out = conv1_w.shape[0]
    w_flat = jnp.asarray(conv1_w, jnp.float32).reshape(c_out, 49).T   # (49, Cout)
    w64 = jnp.dot(jnp.asarray(_S2D_PERM), w_flat).astype(jnp.bfloat16)  # (64, Cout)

    feat = conv1_pallas(x16, w64, ho, wo)                  # (N, Ho*Wo, 64) bf16
    # TODO(synk): interior timm backbone blocks would run here on `feat`.
    return head_pallas(feat, fc_w, fc_b)                   # (N, NC) probs


# ----------------------------------------------------------------------------
# Pure-JAX reference (f32) for a correctness check.
# ----------------------------------------------------------------------------
def _reference_forward(x_nchw, conv1_w, fc_w, fc_b):
    y = jax.lax.conv_general_dilated(
        x_nchw, conv1_w, window_strides=(2, 2), padding=((3, 3), (3, 3)),
        dimension_numbers=("NCHW", "OIHW", "NCHW"))        # (N, 64, Ho, Wo)
    pooled = jnp.mean(y, axis=(2, 3))                      # (N, 64)
    logits = pooled @ fc_w.T + fc_b.reshape(1, -1)
    if fc_w.shape[0] == 1:
        return jax.nn.sigmoid(logits)
    return jax.nn.softmax(logits, axis=-1)


if __name__ == "__main__":
    key = jax.random.PRNGKey(0)
    k_x, k_conv, k_fcw, k_fcb = jax.random.split(key, 4)

    N, Cin, H, W = 2, 1, 16, 16
    c_out, num_classes = 64, 1

    x = jax.random.normal(k_x, (N, Cin, H, W), dtype=jnp.float32)
    conv1_w = jax.random.normal(k_conv, (c_out, Cin, 7, 7), dtype=jnp.float32) * 0.05
    fc_w = jax.random.normal(k_fcw, (num_classes, c_out), dtype=jnp.float32) * 0.1
    fc_b = jax.random.normal(k_fcb, (num_classes,), dtype=jnp.float32) * 0.1

    fwd = jax.jit(classifier_forward)
    out = jax.block_until_ready(fwd(x, conv1_w, fc_w, fc_b))
    ref = jax.block_until_ready(_reference_forward(x, conv1_w, fc_w, fc_b))

    assert out.shape == (N, num_classes)
    assert bool(jnp.all(jnp.isfinite(out)))
    assert bool(jnp.all((out >= 0.0) & (out <= 1.0)))
    assert bool(jnp.allclose(out, ref, atol=2e-2)), (out, ref)
    print("KERNEL_OK")
</pallas_src>

<mosaic_0001>
module attributes {stable_mosaic.version = 11 : i64} {
  func.func @head_kernel(%arg0: i32, %arg1: i32, %arg2: memref<1x64x64xbf16, #tpu.memory_space<vmem>>, %arg3: memref<1x64xf32, #tpu.memory_space<vmem>>, %arg4: memref<1x1xf32, #tpu.memory_space<vmem>>, %arg5: memref<1x1x1xf32, #tpu.memory_space<vmem>>, %arg6: memref<1x64xf32, #tpu.memory_space<vmem>>) attributes {dimension_semantics = [#tpu.dimension_semantics<parallel>, #tpu.dimension_semantics<arbitrary>], iteration_bounds = array<i64: 2, 1>, scalar_prefetch = 0 : i64, scratch_operands = 1 : i64, tpu.core_type = #tpu.core_type<tc>, window_params = [{transform_indices = @transform_0, window_bounds = array<i64: 1, 64, 64>}, {pipeline_mode = #tpu.pipeline_mode<synchronous>, transform_indices = @transform_1, window_bounds = array<i64: 1, 64>}, {pipeline_mode = #tpu.pipeline_mode<synchronous>, transform_indices = @transform_2, window_bounds = array<i64: 1, 1>}, {transform_indices = @transform_3, window_bounds = array<i64: 1, 1, 1>}]} {
    %c0_i32 = arith.constant 0 : i32
    %0 = arith.cmpi eq, %arg1, %c0_i32 : i32
    %1 = arith.extui %0 : i1 to i32
    %c0_i32_0 = arith.constant 0 : i32
    %2 = arith.cmpi ne, %1, %c0_i32_0 : i32
    scf.if %2 {
      %cst_9 = arith.constant 0.000000e+00 : f32
      %14 = vector.broadcast %cst_9 : f32 to vector<1x64xf32>
      %c0_10 = arith.constant 0 : index
      %c0_11 = arith.constant 0 : index
      %15 = vector.load %arg6[%c0_10, %c0_11] : memref<1x64xf32, #tpu.memory_space<vmem>>, vector<1x64xf32>
      tpu.vector_store %arg6[%c0_10, %c0_11], %14 {strides = array<i32>} : memref<1x64xf32, #tpu.memory_space<vmem>>, vector<1x64xf32>,
    } else {
    }
    %c0 = arith.constant 0 : index
    %c0_1 = arith.constant 0 : index
    %3 = vector.load %arg6[%c0, %c0_1] : memref<1x64xf32, #tpu.memory_space<vmem>>, vector<1x64xf32>
    %c0_2 = arith.constant 0 : index
    %c0_3 = arith.constant 0 : index
    %c0_4 = arith.constant 0 : index
    %4 = vector.load %arg2[%c0_2, %c0_3, %c0_4] : memref<1x64x64xbf16, #tpu.memory_space<vmem>>, vector<1x64x64xbf16>
    %5 = vector.shape_cast %4 : vector<1x64x64xbf16> to vector<64x64xbf16>
    %6 = arith.extf %5 : vector<64x64xbf16> to vector<64x64xf32>
    %cst = arith.constant dense<0.000000e+00> : vector<64xf32>
    %7 = vector.multi_reduction <add>, %6, %cst [0] : vector<64x64xf32> to vector<64xf32>
    %8 = vector.shape_cast %7 : vector<64xf32> to vector<1x64xf32>
    %9 = arith.addf %3, %8 : vector<1x64xf32>
    %c0_5 = arith.constant 0 : index
    %c0_6 = arith.constant 0 : index
    %10 = vector.load %arg6[%c0_5, %c0_6] : memref<1x64xf32, #tpu.memory_space<vmem>>, vector<1x64xf32>
    tpu.vector_store %arg6[%c0_5, %c0_6], %9 {strides = array<i32>} : memref<1x64xf32, #tpu.memory_space<vmem>>, vector<1x64xf32>,
    %c0_i32_7 = arith.constant 0 : i32
    %11 = arith.cmpi eq, %arg1, %c0_i32_7 : i32
    %12 = arith.extui %11 : i1 to i32
    %c0_i32_8 = arith.constant 0 : i32
    %13 = arith.cmpi ne, %12, %c0_i32_8 : i32
    scf.if %13 {
      %c0_9 = arith.constant 0 : index
      %c0_10 = arith.constant 0 : index
      %14 = vector.load %arg6[%c0_9, %c0_10] : memref<1x64xf32, #tpu.memory_space<vmem>>, vector<1x64xf32>
      %cst_11 = arith.constant 1.562500e-02 : f32
      %15 = vector.broadcast %cst_11 : f32 to vector<1x64xf32>
      %16 = arith.mulf %14, %15 : vector<1x64xf32>
      %c0_12 = arith.constant 0 : index
      %c0_13 = arith.constant 0 : index
      %17 = vector.load %arg3[%c0_12, %c0_13] : memref<1x64xf32, #tpu.memory_space<vmem>>, vector<1x64xf32>
      %18 = arith.mulf %16, %17 : vector<1x64xf32>
      %cst_14 = arith.constant dense<0.000000e+00> : vector<1xf32>
      %19 = vector.multi_reduction <add>, %18, %cst_14 [1] : vector<1x64xf32> to vector<1xf32>
      %20 = vector.shape_cast %19 : vector<1xf32> to vector<1x1xf32>
      %c0_15 = arith.constant 0 : index
      %c0_16 = arith.constant 0 : index
      %21 = vector.load %arg4[%c0_15, %c0_16] : memref<1x1xf32, #tpu.memory_space<vmem>>, vector<1x1xf32>
      %22 = arith.addf %20, %21 : vector<1x1xf32>
      %23 = arith.negf %22 : vector<1x1xf32>
      %24 = math.exp %23 : vector<1x1xf32>
      %cst_17 = arith.constant 1.000000e+00 : f32
      %25 = vector.broadcast %cst_17 : f32 to vector<1x1xf32>
      %26 = arith.addf %25, %24 : vector<1x1xf32>
      %27 = arith.divf %25, %26 : vector<1x1xf32>
      %c0_18 = arith.constant 0 : index
      %c0_19 = arith.constant 0 : index
      %c0_20 = arith.constant 0 : index
      %28 = vector.load %arg5[%c0_18, %c0_19, %c0_20] : memref<1x1x1xf32, #tpu.memory_space<vmem>>, vector<1x1x1xf32>
      %29 = vector.shape_cast %28 : vector<1x1x1xf32> to vector<1x1xf32>
      %30 = vector.shape_cast %27 : vector<1x1xf32> to vector<1x1x1xf32>
      tpu.vector_store %arg5[%c0_18, %c0_19, %c0_20], %30 {strides = array<i32>} : memref<1x1x1xf32, #tpu.memory_space<vmem>>, vector<1x1x1xf32>,
    } else {
    }
    return
  }
  func.func @transform_0(%arg0: i32, %arg1: i32) -> (i32, i32, i32) {
    %c0_i32 = arith.constant 0 : i32
    %c0_i32_0 = arith.constant 0 : i32
    return %arg0, %arg1, %c0_i32 : i32, i32, i32
  }
  func.func @transform_1(%arg0: i32, %arg1: i32) -> (i32, i32) {
    %c0_i32 = arith.constant 0 : i32
    %c0_i32_0 = arith.constant 0 : i32
    %c0_i32_1 = arith.constant 0 : i32
    return %c0_i32, %c0_i32_0 : i32, i32
  }
  func.func @transform_2(%arg0: i32, %arg1: i32) -> (i32, i32) {
    %c0_i32 = arith.constant 0 : i32
    %c0_i32_0 = arith.constant 0 : i32
    %c0_i32_1 = arith.constant 0 : i32
    return %c0_i32, %c0_i32_0 : i32, i32
  }
  func.func @transform_3(%arg0: i32, %arg1: i32) -> (i32, i32, i32) {
    %c0_i32 = arith.constant 0 : i32
    %c0_i32_0 = arith.constant 0 : i32
    %c0_i32_1 = arith.constant 0 : i32
    return %arg0, %c0_i32, %c0_i32_0 : i32, i32, i32
  }
}

module attributes {stable_mosaic.version = 11 : i64} {
  func.func @conv1_kernel(%arg0: i32, %arg1: i32, %arg2: memref<1x11x8x16xbf16, #tpu.memory_space<vmem>>, %arg3: memref<64x64xbf16, #tpu.memory_space<vmem>>, %arg4: memref<1x64x64xbf16, #tpu.memory_space<vmem>>) attributes {dimension_semantics = [#tpu.dimension_semantics<parallel>, #tpu.dimension_semantics<parallel>], iteration_bounds = array<i64: 2, 1>, scalar_prefetch = 0 : i64, scratch_operands = 0 : i64, tpu.core_type = #tpu.core_type<tc>, window_params = [{transform_indices = @transform_0, window_bounds = array<i64: 1, 11, 8, 16>}, {pipeline_mode = #tpu.pipeline_mode<synchronous>, transform_indices = @transform_1, window_bounds = array<i64: 64, 64>}, {transform_indices = @transform_2, window_bounds = array<i64: 1, 64, 64>}]} {
    %c8_i32 = arith.constant 8 : i32
    %0 = arith.muli %arg1, %c8_i32 : i32
    %c0_i32 = arith.constant 0 : i32
    %1 = arith.addi %0, %c0_i32 : i32
    %c0 = arith.constant 0 : index
    %2 = arith.index_cast %1 : i32 to index
    %c0_0 = arith.constant 0 : index
    %c0_1 = arith.constant 0 : index
    %3 = vector.load %arg2[%c0, %2, %c0_0, %c0_1] : memref<1x11x8x16xbf16, #tpu.memory_space<vmem>>, vector<1x8x8x16xbf16>
    %4 = vector.shape_cast %3 : vector<1x8x8x16xbf16> to vector<8x8x16xbf16>
    %c1_i32 = arith.constant 1 : i32
    %5 = arith.addi %0, %c1_i32 : i32
    %c0_2 = arith.constant 0 : index
    %6 = arith.index_cast %5 : i32 to index
    %c0_3 = arith.constant 0 : index
    %c0_4 = arith.constant 0 : index
    %7 = vector.load %arg2[%c0_2, %6, %c0_3, %c0_4] : memref<1x11x8x16xbf16, #tpu.memory_space<vmem>>, vector<1x8x8x16xbf16>
    %8 = vector.shape_cast %7 : vector<1x8x8x16xbf16> to vector<8x8x16xbf16>
    %c2_i32 = arith.constant 2 : i32
    %9 = arith.addi %0, %c2_i32 : i32
    %c0_5 = arith.constant 0 : index
    %10 = arith.index_cast %9 : i32 to index
    %c0_6 = arith.constant 0 : index
    %c0_7 = arith.constant 0 : index
    %11 = vector.load %arg2[%c0_5, %10, %c0_6, %c0_7] : memref<1x11x8x16xbf16, #tpu.memory_space<vmem>>, vector<1x8x8x16xbf16>
    %12 = vector.shape_cast %11 : vector<1x8x8x16xbf16> to vector<8x8x16xbf16>
    %c3_i32 = arith.constant 3 : i32
    %13 = arith.addi %0, %c3_i32 : i32
    %c0_8 = arith.constant 0 : index
    %14 = arith.index_cast %13 : i32 to index
    %c0_9 = arith.constant 0 : index
    %c0_10 = arith.constant 0 : index
    %15 = vector.load %arg2[%c0_8, %14, %c0_9, %c0_10] : memref<1x11x8x16xbf16, #tpu.memory_space<vmem>>, vector<1x8x8x16xbf16>
    %16 = vector.shape_cast %15 : vector<1x8x8x16xbf16> to vector<8x8x16xbf16>
    %17 = tpu.concatenate %4, %8, %12, %16 in 2 : vector<8x8x16xbf16>, vector<8x8x16xbf16>, vector<8x8x16xbf16>, vector<8x8x16xbf16> -> vector<8x8x64xbf16>
    %18 = vector.shape_cast %17 : vector<8x8x64xbf16> to vector<64x64xbf16>
    %c0_11 = arith.constant 0 : index
    %c0_12 = arith.constant 0 : index
    %19 = vector.load %arg3[%c0_11, %c0_12] : memref<64x64xbf16, #tpu.memory_space<vmem>>, vector<64x64xbf16>
    %cst = arith.constant dense<0.000000e+00> : vector<64x64xf32>
    %20 = tpu.matmul %18, %19, %cst {dimension_numbers = #tpu.dot_dimension_numbers<[1], [0], [0], [1], [0, 0, 1, 1], [], []>} : vector<64x64xbf16>, vector<64x64xbf16>, vector<64x64xf32> -> vector<64x64xf32>
    %21 = arith.truncf %20 : vector<64x64xf32> to vector<64x64xbf16>
    %c0_13 = arith.constant 0 : index
    %c0_14 = arith.constant 0 : index
    %c0_15 = arith.constant 0 : index
    %22 = vector.load %arg4[%c0_13, %c0_14, %c0_15] : memref<1x64x64xbf16, #tpu.memory_space<vmem>>, vector<1x64x64xbf16>
    %23 = vector.shape_cast %22 : vector<1x64x64xbf16> to vector<64x64xbf16>
    %24 = vector.shape_cast %21 : vector<64x64xbf16> to vector<1x64x64xbf16>
    tpu.vector_store %arg4[%c0_13, %c0_14, %c0_15], %24 {strides = array<i32>} : memref<1x64x64xbf16, #tpu.memory_space<vmem>>, vector<1x64x64xbf16>,
    return
  }
  func.func @transform_0(%arg0: i32, %arg1: i32) -> (i32, i32, i32, i32) {
    %c0_i32 = arith.constant 0 : i32
    %c0_i32_0 = arith.constant 0 : i32
    %c0_i32_1 = arith.constant 0 : i32
    %c0_i32_2 = arith.constant 0 : i32
    return %arg0, %c0_i32, %c0_i32_0, %c0_i32_1 : i32, i32, i32, i32
  }
  func.func @transform_1(%arg0: i32, %arg1: i32) -> (i32, i32) {
    %c0_i32 = arith.constant 0 : i32
    %c0_i32_0 = arith.constant 0 : i32
    %c0_i32_1 = arith.constant 0 : i32
    return %c0_i32, %c0_i32_0 : i32, i32
  }
  func.func @transform_2(%arg0: i32, %arg1: i32) -> (i32, i32, i32) {
    %c0_i32 = arith.constant 0 : i32
    %c0_i32_0 = arith.constant 0 : i32
    return %arg0, %arg1, %c0_i32 : i32, i32, i32
  }
}

</mosaic_0001>

<bundles_post_ra>
// kernel: classifier_forward.3
= control target key start
LH: loop header
LB: loop body
LE: loop exit
PB: predicated region body
PF: predicated region fallthrough
CT: control target
= control target key end

     0   :  { %s433_s14 = smov 0   ;;  %s435_s15 = smov 0   ;;  %s484_s0 = inlined_call_operand.vmem [shape: bf16[2,64,64], index: 0, kind: input, shape index: {}]   ;;  %s485_s1 = inlined_call_operand.vmem [shape: f32[1,64], index: 1, kind: input, shape index: {}]   ;;  %s486_s2 = inlined_call_operand.<no memory space> [shape: f32[1,1], index: 2, kind: input, shape index: {}]   ;;  %s487_s3 = inlined_call_operand.vmem [shape: f32[2,1,1], index: 3, kind: output, shape index: {}]  }
   0x1   :  { %v8_v0 = vstv %s486_s2  ;;  %s437_s16 = smov 0  }
   0x2   :  { %9 = vst [vmem:[#allocation3] sm:$0x1] %v8_v0 }
   0x3 LB: > { %s27_s2 = sadd.s32 1, %s403_s15  ;;  %p330_p0 = scmp.ge.s32.totalorder %s407_s16, 1  ;;  %s407_s16 = sphi %s437_s16, %s15_s16   ;;  %s403_s15 = sphi %s435_s15, %s489_s15   ;;  %s399_s14 = sphi %s433_s14, %s488_s14  }
   0x4   : > { %p29_p1 = scmp.ge.s32.totalorder %s27_s2, 2  ;;  %p158_p2 = scmp.lt.s32.totalorder %s407_s16, 3 }
   0x6   : > { %s491_s2 = smov (%p29_p1, %s27_s2), 0  ;;  %p159_p3 = pnand %p330_p0, %p158_p2 }
   0x7   : > { %p185_p4 = scmp.lt.s32.totalorder (!%p159_p3), %s399_s14, 1  ;;  %vm201_vm0 = vcmask (!%p159_p3), 516096   ;;  %v409_v1 = vmov (!%p159_p3), 0.0   ;;  %vm220_vm1 = vcmask (!%p159_p3), 523264   ;;  %v250_v38 = vld [vmem:[%s485_s1] sm:$0x1] (!%p159_p3) }
   0x8   : > { %162 = sbr.rel (%p159_p3) target bundleno = 234 (0xea), region = 32  ;;  %202 = vst.msk [vmem:[#allocation2] sm:$0x1] (!%p159_p3), %vm201_vm0, %v409_v1  ;;  %vm263_vm2 = vcmask (!%p159_p3), 0  }
   0x9   : > { %v255_v42 = vld [vmem:[#allocation3] sm:$0x1] (!%p159_p3) }
   0xf   : > { %s493_s14 = smov (!%p185_p4, %s399_s14), 1  ;;  %v203_v34 = vld [vmem:[#allocation2] sm:$0x1] }
  0x10   : > { %s336_s17 = sshll.u32 %s493_s14, 5  ;;  %s196_s25 = scalar_lea.vmem %s487_s3, %s493_s14 }
  0x11   : > { %s192_s20 = scalar_lea.vmem %s484_s0, %s336_s17 }
  0x12   : > { %v338_v2 = vld [vmem:[%s192_s20] sm:$0xff]   ;;  %v353_v3 = vld [vmem:[%s192_s20 + $0x8] sm:$0xff]   ;;  %v354_v4 = vld [vmem:[%s192_s20 + $0x10] sm:$0xff]  }
  0x13   : > { %v339_v5 = vunpack.c.l.bf16 %v338_v2  ;;  %v340_v6 = vunpack.c.h.bf16 %v338_v2  ;;  %v343_v7 = vunpack.c.l.bf16 %v353_v3  ;;  %v344_v8 = vunpack.c.h.bf16 %v353_v3  ;;  %v355_v13 = vld [vmem:[%s192_s20 + $0x18] sm:$0xff]  }
  0x14   : > { %v347_v9 = vunpack.c.l.bf16 %v354_v4  ;;  %v348_v15 = vunpack.c.h.bf16 %v354_v4  ;;  %v351_v18 = vunpack.c.l.bf16 %v355_v13  ;;  %v352_v21 = vunpack.c.h.bf16 %v355_v13 }
  0x15   : > { %v221_v10 = vsel %vm220_vm1, %v339_v5, 0.0  ;;  %v222_v11 = vsel %vm220_vm1, %v340_v6, 0.0  ;;  %v224_v12 = vsel %vm220_vm1, %v343_v7, 0.0  ;;  %v226_v16 = vsel %vm220_vm1, %v344_v8, 0.0 }
  0x16   : > { %v223_v14 = vadd.f32 %v222_v11, %v221_v10  ;;  %v228_v19 = vsel %vm220_vm1, %v347_v9, 0.0  ;;  %v230_v22 = vsel %vm220_vm1, %v348_v15, 0.0  ;;  %v232_v24 = vsel %vm220_vm1, %v351_v18, 0.0 }
  0x17   : > { %v234_v26 = vsel %vm220_vm1, %v352_v21, 0.0 }
  0x18   : > { %v225_v17 = vadd.f32 %v224_v12, %v223_v14 }
  0x1a   : > { %v227_v20 = vadd.f32 %v226_v16, %v225_v17 }
  0x1c   : > { %v229_v23 = vadd.f32 %v228_v19, %v227_v20 }
  0x1e   : > { %v231_v25 = vadd.f32 %v230_v22, %v229_v23 }
  0x20   : > { %v233_v27 = vadd.f32 %v232_v24, %v231_v25 }
  0x22   : > { %v235_v28 = vadd.f32 %v234_v26, %v233_v27 }
  0x24   : > { %v236_v29 = vrot.slane %v235_v28, 4 }
  0x26   : > { %v237_v30 = vadd.f32 %v236_v29, %v235_v28 }
  0x28   : > { %v238_v31 = vrot.slane %v237_v30, 2 }
  0x2a   : > { %v239_v32 = vadd.f32 %v238_v31, %v237_v30 }
  0x2c   : > { %v240_v33 = vrot.slane %v239_v32, 1 }
  0x2e   : > { %v241_v35 = vadd.f32 %v240_v33, %v239_v32 }
  0x30   : > { %v242_v36 = vadd.f32 %v241_v35, %v203_v34 }
  0x32   : > { %244 = vst.msk [vmem:[#allocation2] sm:$0x1] %vm201_vm0, %v242_v36 }
  0x39   : > { %v248_v37 = vld [vmem:[#allocation2] sm:$0x1] }
  0x3a   : > { %v249_v39 = vmul.f32 0.015625, %v248_v37 }
  0x3c   : > { %v251_v40 = vmul.f32 %v250_v38, %v249_v39 }
  0x3e   : > { %v252_v41 = vsel %vm201_vm0, %v251_v40, 0.0 }
  0x3f   : > { %253 = vadd.xlane.f32.xlu0 %v252_v41 }
  0xcc   : > { %v254_v43 = vpop.xlane.xlu0 %253 }
  0xcd   : > { %v256_v44 = vadd.f32 %v255_v42, %v254_v43 }
  0xcf   : > { %v333_v45 = vmul.f32 -1.442695, %v256_v44 }
  0xd1   : > { %381 = vpow2.f32 %v333_v45 }
  0xdb   : > { %v382_v46 = vpop.eup %381 }
  0xdc   : > { %v260_v47 = vadd.f32 1.0, %v382_v46 }
  0xde   : > { %383 = vrcp.f32 %v260_v47 }
  0xe8   : > { %v384_v48 = vpop.eup %383 }
  0xe9   : > { %264 = vst.msk [vmem:[%s196_s25] sm:$0x1] %vm263_vm2, %v384_v48 }
  0xea PF: > { %s15_s16 = sadd.s32 1, %s407_s16   ;;  %s488_s14 = smov %s403_s15 }
  0xeb   : > { %p12_p5 = scmp.ge.s32.totalorder %s15_s16, 4   ;;  %s489_s15 = smov %s491_s2 }
  0xed   :  { %14 = sbr.rel (!%p12_p5) target bundleno = 3 (0x3), region = 70 }

// kernel: classifier_forward.2
= control target key start
LH: loop header
LB: loop body
LE: loop exit
PB: predicated region body
PF: predicated region fallthrough
CT: control target
= control target key end

     0   :  { %s874_s9 = smov 0   ;;  %s876_s10 = smov 0   ;;  %s1001_s0 = inlined_call_operand.vmem [shape: bf16[2,11,8,16], index: 0, kind: input, shape index: {}]   ;;  %s1002_s1 = inlined_call_operand.vmem [shape: bf16[64,64], index: 1, kind: input, shape index: {}]   ;;  %s1003_s2 = inlined_call_operand.vmem [shape: bf16[2,64,64], index: 2, kind: output, shape index: {}]  }
   0x1   :  { %s878_s11 = smov 0  }
   0x2 LB: > { %s24_s12 = sadd.s32 1, %s850_s10  ;;  %p661_p0 = scmp.ge.s32.totalorder %s854_s11, 1  ;;  %s854_s11 = sphi %s878_s11, %s12_s11   ;;  %s850_s10 = sphi %s876_s10, %s1005_s10   ;;  %s846_s9 = sphi %s874_s9, %s1004_s9  }
   0x3   : > { %p26_p1 = scmp.ge.s32.totalorder %s24_s12, 2  ;;  %p126_p2 = scmp.lt.s32.totalorder %s854_s11, 3 }
   0x5   : > { %s1007_s12 = smov (%p26_p1, %s24_s12), 0  ;;  %p127_p3 = pnand %p661_p0, %p126_p2 }
   0x6   : > { %p152_p4 = scmp.lt.s32.totalorder (!%p127_p3), %s846_s9, 1  ;;  %s856_s17 = smov (!%p127_p3), 16   ;;  %v828_v11 = vld [vmem:[%s1002_s1] sm:$0xff] (!%p127_p3)   ;;  %v829_v13 = vld [vmem:[%s1002_s1 + $0x8] sm:$0xff] (!%p127_p3)   ;;  %v830_v15 = vld [vmem:[%s1002_s1 + $0x10] sm:$0xff] (!%p127_p3)   ;;  %vm332_vm0 = vcmask (!%p127_p3), 130048  }
   0x7   : > { %130 = sbr.rel (%p127_p3) target bundleno = 399 (0x18f), region = 28  ;;  %s857_s18 = smov (!%p127_p3), 32   ;;  %752 = vmatprep.subr.bf16.mxu0 (!%p127_p3), %v828_v11  ;;  %768 = vmatprep.subr.bf16.mxu1 (!%p127_p3), %v828_v11  ;;  %v831_v18 = vld [vmem:[%s1002_s1 + $0x18] sm:$0xff] (!%p127_p3)   ;;  %vm357_vm1 = vcmask (!%p127_p3), 261120   ;;  %vm374_vm2 = vcmask (!%p127_p3), 392192   ;;  %vm443_vm3 = vcmask (!%p127_p3), 523264  }
   0x8   : > { %753 = vmatpush3.bf16.msra.mxu0 (!%p127_p3), %v828_v11  ;;  %772 = vmatpush3.bf16.msra.mxu1 (!%p127_p3), %v828_v11  ;;  %s858_s27 = smov (!%p127_p3), 48   ;;  %vm553_vm4 = vcmask (!%p127_p3), 519168  }
   0x9   : > { %754 = vmatprep.subr.bf16.mxu0 (!%p127_p3), %v829_v13  ;;  %769 = vmatprep.subr.bf16.mxu1 (!%p127_p3), %v829_v13 }
   0xc   : > { %755 = vmatpush3.bf16.msra.mxu0 (!%p127_p3), %v829_v13  ;;  %773 = vmatpush3.bf16.msra.mxu1 (!%p127_p3), %v829_v13 }
   0xd   : > { %756 = vmatprep.subr.bf16.mxu0 (!%p127_p3), %v830_v15  ;;  %770 = vmatprep.subr.bf16.mxu1 (!%p127_p3), %v830_v15 }
   0xe   : > { %s1009_s9 = smov (!%p152_p4, %s846_s9), 1 }
   0xf   : > { %s776_s13 = smul.u32 44, %s1009_s9  ;;  %s735_s28 = sshll.u32 %s1009_s9, 5 }
  0x10   : > { %757 = vmatpush3.bf16.msra.mxu0 %v830_v15  ;;  %774 = vmatpush3.bf16.msra.mxu1 %v830_v15  ;;  %s165_s3 = scalar_lea.vmem %s1003_s2, %s735_s28 }
  0x11   : > { %s898_s16 = scalar_lea.vmem %s1001_s0, %s776_s13  ;;  %758 = vmatprep.subr.bf16.mxu0 %v831_v18  ;;  %771 = vmatprep.subr.bf16.mxu1 %v831_v18 }
  0x12   : > { %v804_v0 = vld [vmem:[%s898_s16 + $0x14] ss:$0 sps:$4 sm:$0xff]   ;;  %v805_v1 = vld [vmem:[%s898_s16 + $0x4] ss:$0 sps:$4 sm:$0xff]   ;;  %v806_v2 = vld [vmem:[%s898_s16 + $0x18] ss:$0 sps:$4 sm:$0xff]  }
  0x13   : > { %244 = vrot.lane.b32.xlu1 %v804_v0, %s856_s17  ;;  %236 = vrot.lane.b32.xlu0 %v805_v1, %s856_s17  ;;  %v807_v3 = vld [vmem:[%s898_s16 + $0x8] ss:$0 sps:$4 sm:$0xff]   ;;  %v808_v4 = vld [vmem:[%s898_s16 + $0x10] ss:$0 sps:$4 sm:$0xff]  }
  0x14   : > { %v809_v5 = vld [vmem:[%s898_s16 + $0xc] ss:$0 sps:$4 sm:$0xff]   ;;  %v810_v6 = vld [vmem:[%s898_s16 + $0x20] ss:$0 sps:$4 sm:$0xff]   ;;  %v811_v7 = vld [vmem:[%s898_s16 + $0x1c] ss:$0 sps:$4 sm:$0xff]   ;;  %759 = vmatpush3.bf16.msra.mxu0 %v831_v18  ;;  %775 = vmatpush3.bf16.msra.mxu1 %v831_v18 }
  0x15   : > { %v812_v8 = vld [vmem:[%s898_s16 + $0xc] ss:$0 sps:$4 sm:$0xff]   ;;  %v813_v9 = vld [vmem:[%s898_s16 + $0x8] ss:$0 sps:$4 sm:$0xff]   ;;  %v814_v10 = vld [vmem:[%s898_s16 + $0x1c] ss:$0 sps:$4 sm:$0xff]  }
  0x16   : > { %v815_v12 = vld [vmem:[%s898_s16 + $0x18] ss:$0 sps:$4 sm:$0xff]   ;;  %v816_v14 = vld [vmem:[%s898_s16 + $0x14] ss:$0 sps:$4 sm:$0xff]   ;;  %v817_v16 = vld [vmem:[%s898_s16 + $0x10] ss:$0 sps:$4 sm:$0xff]  }
  0x17   : > { %246 = vrot.lane.b32.xlu1 %v806_v2, %s856_s17  ;;  %238 = vrot.lane.b32.xlu0 %v807_v3, %s856_s17  ;;  %v818_v17 = vld [vmem:[%s898_s16 + $0x24] ss:$0 sps:$4 sm:$0xff]   ;;  %v819_v19 = vld [vmem:[%s898_s16 + $0x20] ss:$0 sps:$4 sm:$0xff]  }
  0x18   : > { %v820_v20 = vld [vmem:[%s898_s16 + $0x10] ss:$0 sps:$4 sm:$0xff]   ;;  %v821_v21 = vld [vmem:[%s898_s16 + $0xc] ss:$0 sps:$4 sm:$0xff]   ;;  %v822_v22 = vld [vmem:[%s898_s16 + $0x20] ss:$0 sps:$4 sm:$0xff]  }
  0x19   : > { %v823_v23 = vld [vmem:[%s898_s16 + $0x1c] ss:$0 sps:$4 sm:$0xff]   ;;  %v824_v24 = vld [vmem:[%s898_s16 + $0x18] ss:$0 sps:$4 sm:$0xff]   ;;  %v825_v25 = vld [vmem:[%s898_s16 + $0x14] ss:$0 sps:$4 sm:$0xff]  }
  0x1a   : > { %v826_v26 = vld [vmem:[%s898_s16 + $0x28] ss:$0 sps:$4 sm:$0xff]   ;;  %v827_v27 = vld [vmem:[%s898_s16 + $0x24] ss:$0 sps:$4 sm:$0xff]   ;;  %v171_v44 = vld [vmem:[%s898_s16] sm:$0xf] }
  0x1b   : > { %242 = vrot.lane.b32.xlu1 %v808_v4, %s856_s17  ;;  %240 = vrot.lane.b32.xlu0 %v809_v5, %s856_s17  ;;  %v172_v42 = vld [vmem:[%s898_s16 + $0x4] sm:$0xf]  ;;  %v176_v48 = vld [vmem:[%s898_s16 + $0x14] sm:$0xf] }
  0x1c   : > { %v175_v51 = vld [vmem:[%s898_s16 + $0x10] sm:$0xf]  ;;  %v174_v59 = vld [vmem:[%s898_s16 + $0xc] sm:$0xf]  ;;  %v173_v62 = vld [vmem:[%s898_s16 + $0x8] sm:$0xf] }
  0x1f   : > { %250 = vrot.lane.b32.xlu1 %v810_v6, %s856_s17  ;;  %248 = vrot.lane.b32.xlu0 %v811_v7, %s856_s17  ;;  %v178_v6 = vld [vmem:[%s898_s16 + $0x1c] sm:$0xf] }
  0x23   : > { %278 = vrot.lane.b32.xlu1 %v812_v8, %s857_s18  ;;  %276 = vrot.lane.b32.xlu0 %v813_v9, %s857_s18  ;;  %v177_v9 = vld [vmem:[%s898_s16 + $0x18] sm:$0xf] }
  0x27   : > { %286 = vrot.lane.b32.xlu1 %v814_v10, %s857_s18  ;;  %284 = vrot.lane.b32.xlu0 %v815_v12, %s857_s18 }
  0x2b   : > { %282 = vrot.lane.b32.xlu1 %v816_v14, %s857_s18  ;;  %280 = vrot.lane.b32.xlu0 %v817_v16, %s857_s18 }
  0x2f   : > { %290 = vrot.lane.b32.xlu1 %v818_v17, %s857_s18  ;;  %288 = vrot.lane.b32.xlu0 %v819_v19, %s857_s18 }
  0x33   : > { %318 = vrot.lane.b32.xlu1 %v820_v20, %s858_s27  ;;  %316 = vrot.lane.b32.xlu0 %v821_v21, %s858_s27 }
  0x37   : > { %326 = vrot.lane.b32.xlu1 %v822_v22, %s858_s27  ;;  %324 = vrot.lane.b32.xlu0 %v823_v23, %s858_s27 }
  0x3b   : > { %322 = vrot.lane.b32.xlu1 %v824_v24, %s858_s27  ;;  %320 = vrot.lane.b32.xlu0 %v825_v25, %s858_s27 }
  0x3f   : > { %330 = vrot.lane.b32.xlu1 %v826_v26, %s858_s27  ;;  %328 = vrot.lane.b32.xlu0 %v827_v27, %s858_s27 }
  0x85   : > { %v245_v28 = vpop.permute.xlu1 %244  ;;  %v237_v29 = vpop.permute.xlu0 %236 }
  0x86   : > { %v335_v47 = vsel %vm332_vm0, %v171_v44, %v237_v29  ;;  %v347_v58 = vsel %vm332_vm0, %v175_v51, %v245_v28 }
  0x89   : > { %v247_v30 = vpop.permute.xlu1 %246  ;;  %v239_v31 = vpop.permute.xlu0 %238 }
  0x8a   : > { %v338_v46 = vsel %vm332_vm0, %v172_v42, %v239_v31  ;;  %v350_v56 = vsel %vm332_vm0, %v176_v48, %v247_v30 }
  0x8d   : > { %v243_v32 = vpop.permute.xlu1 %242  ;;  %v241_v33 = vpop.permute.xlu0 %240 }
  0x8e   : > { %v344_v3 = vsel %vm332_vm0, %v174_v59, %v243_v32  ;;  %v341_v5 = vsel %vm332_vm0, %v173_v62, %v241_v33 }
  0x91   : > { %v251_v34 = vpop.permute.xlu1 %250  ;;  %v249_v35 = vpop.permute.xlu0 %248 }
  0x92   : > { %v356_v14 = vsel %vm332_vm0, %v178_v6, %v251_v34  ;;  %v353_v16 = vsel %vm332_vm0, %v177_v9, %v249_v35 }
  0x95   : > { %v279_v36 = vpop.permute.xlu1 %278  ;;  %v277_v37 = vpop.permute.xlu0 %276 }
  0x96   : > { %v361_v49 = vsel %vm357_vm1, %v338_v46, %v279_v36  ;;  %v359_v52 = vsel %vm357_vm1, %v335_v47, %v277_v37 }
  0x99   : > { %v287_v38 = vpop.permute.xlu1 %286  ;;  %v285_v39 = vpop.permute.xlu0 %284 }
  0x9a   : > { %v369_v60 = vsel %vm357_vm1, %v350_v56, %v287_v38  ;;  %v367_v63 = vsel %vm357_vm1, %v347_v58, %v285_v39 }
  0x9d   : > { %v283_v40 = vpop.permute.xlu1 %282  ;;  %v281_v41 = vpop.permute.xlu0 %280 }
  0x9e   : > { %v365_v7 = vsel %vm357_vm1, %v344_v3, %v283_v40  ;;  %v363_v10 = vsel %vm357_vm1, %v341_v5, %v281_v41 }
  0xa1   : > { %v291_v43 = vpop.permute.xlu1 %290  ;;  %v289_v45 = vpop.permute.xlu0 %288 }
  0xa2   : > { %v373_v17 = vsel %vm357_vm1, %v356_v14, %v291_v43  ;;  %v371_v19 = vsel %vm357_vm1, %v353_v16, %v289_v45 }
  0xa5   : > { %v319_v50 = vpop.permute.xlu1 %318  ;;  %v317_v54 = vpop.permute.xlu0 %316 }
  0xa6   : > { %v378_v53 = vsel %vm374_vm2, %v361_v49, %v319_v50  ;;  %v376_v55 = vsel %vm374_vm2, %v359_v52, %v317_v54 }
  0xa7   : > { %v713_v57 = vcombine.low %v376_v55, %v378_v53 }
  0xa9   : > { %v327_v61 = vpop.permute.xlu1 %326  ;;  %v325_v1 = vpop.permute.xlu0 %324  ;;  %760 = vmatprep.mubr.msk.bf16.mxu0 %vm443_vm3, %v713_v57 }
  0xaa   : > { %v386_v0 = vsel %vm374_vm2, %v369_v60, %v327_v61  ;;  %v384_v2 = vsel %vm374_vm2, %v367_v63, %v325_v1 }
  0xab   : > { %v715_v4 = vcombine.low %v384_v2, %v386_v0 }
  0xad   : > { %v323_v8 = vpop.permute.xlu1 %322  ;;  %v321_v12 = vpop.permute.xlu0 %320  ;;  %764 = vmatprep.mubr.msk.bf16.mxu1 %vm443_vm3, %v715_v4 }
  0xae   : > { %v382_v11 = vsel %vm374_vm2, %v365_v7, %v323_v8  ;;  %v380_v13 = vsel %vm374_vm2, %v363_v10, %v321_v12 }
  0xaf   : > { %v714_v15 = vcombine.low %v380_v13, %v382_v11 }
  0xb1   : > { %v331_v18 = vpop.permute.xlu1 %330  ;;  %v329_v21 = vpop.permute.xlu0 %328  ;;  %761 = vmatmul.mubr.msk.bf16.vlgmr.msra.gmra.mrb[0].mxu0 %vm443_vm3, %v714_v15 }
  0xb2   : > { %v390_v20 = vsel %vm374_vm2, %v373_v17, %v331_v18  ;;  %v388_v22 = vsel %vm374_vm2, %v371_v19, %v329_v21 }
  0xb3   : > { %v716_v23 = vcombine.low %v388_v22, %v390_v20 }
  0xb5   : > { %765 = vmatmul.mubr.msk.bf16.vlgmr.msra.gmra.mrb[0].mxu1 %vm443_vm3, %v716_v23 }
 0x184   : > { %v762_v24 = vpop.f32.mrb[0].mxu0 }
 0x185   : > { %v738_v25 = vpack.c.bf16 %v762_v24, %v762_v24  ;;  %v490_v26 = vpop.f32.mrb[1].mxu0 }
 0x186   : > { %v736_v27 = vpack.c.bf16 %v490_v26, %v490_v26  ;;  %v763_v28 = vpop.f32.mrb[2].mxu0 }
 0x187   : > { %556 = vst.msk [vmem:[%s165_s3 + $0x8] sm:$0xf] %vm553_vm4, %v738_v25  ;;  %v739_v29 = vpack.c.bf16 %v763_v28, %v763_v28  ;;  %v493_v30 = vpop.f32.mrb[3].mxu0 }
 0x188   : > { %554 = vst.msk [vmem:[%s165_s3] sm:$0xf] %vm553_vm4, %v736_v27  ;;  %v737_v31 = vpack.c.bf16 %v493_v30, %v493_v30  ;;  %v766_v32 = vpop.f32.mrb[0].mxu1 }
 0x189   : > { %557 = vst.msk [vmem:[%s165_s3 + $0xc] sm:$0xf] %vm553_vm4, %v739_v29  ;;  %v742_v33 = vpack.c.bf16 %v766_v32, %v766_v32  ;;  %v506_v34 = vpop.f32.mrb[1].mxu1 }
 0x18a   : > { %555 = vst.msk [vmem:[%s165_s3 + $0x4] sm:$0xf] %vm553_vm4, %v737_v31  ;;  %v740_v35 = vpack.c.bf16 %v506_v34, %v506_v34  ;;  %v767_v36 = vpop.f32.mrb[2].mxu1 }
 0x18b   : > { %560 = vst.msk [vmem:[%s165_s3 + $0x18] sm:$0xf] %vm553_vm4, %v742_v33  ;;  %v743_v37 = vpack.c.bf16 %v767_v36, %v767_v36  ;;  %v509_v38 = vpop.f32.mrb[3].mxu1 }
 0x18c   : > { %558 = vst.msk [vmem:[%s165_s3 + $0x10] sm:$0xf] %vm553_vm4, %v740_v35  ;;  %v741_v39 = vpack.c.bf16 %v509_v38, %v509_v38 }
 0x18d   : > { %561 = vst.msk [vmem:[%s165_s3 + $0x1c] sm:$0xf] %vm553_vm4, %v743_v37 }
 0x18e   : > { %559 = vst.msk [vmem:[%s165_s3 + $0x14] sm:$0xf] %vm553_vm4, %v741_v39 }
 0x18f PF: > { %s12_s11 = sadd.s32 1, %s854_s11   ;;  %s1004_s9 = smov %s850_s10 }
 0x190   : > { %p9_p5 = scmp.ge.s32.totalorder %s12_s11, 4   ;;  %s1005_s10 = smov %s1007_s12 }
 0x192   :  { %11 = sbr.rel (!%p9_p5) target bundleno = 2 (0x2), region = 62 }

</bundles_post_ra>
